<compile_context>
chip_gen: v7x
topology: tpu7x:2x2x1
jax: 0.10.0
libtpu: 0.0.40
codegen_flags: <defaults>
</compile_context>

<pallas_src>
import jax
import jax.numpy as jnp
from jax.experimental import pallas as pl
from jax.experimental.pallas import tpu as pltpu


def _round_up(a, m):
    return ((a + m - 1) // m) * m


def _make_tv_kernel(h, w, b, l):
    """Kernel for (b, l = h*w)-shaped blocks of flattened planes."""
    g = b // 8  # sublane groups per block

    def kernel(x_ref, wmask_ref, hmask_ref, o_ref):
        i = pl.program_id(1)

        @pl.when(i == 0)
        def _init():
            o_ref[...] = jnp.zeros_like(o_ref)

        x = x_ref[...].astype(jnp.float32)  # (b, l)

        terms = []
        if w > 1:
            # Right neighbour within an image row: x[:, (j + 1) % l].
            x_r = pltpu.roll(x, shift=l - 1, axis=1)
            terms.append(jnp.abs(x_r - x) * wmask_ref[...])
        if h > 1:
            # Neighbour one image row down: x[:, (j + w) % l].
            x_d = pltpu.roll(x, shift=l - w, axis=1)
            terms.append(jnp.abs(x_d - x) * hmask_ref[...])

        if terms:
            total = terms[0]
            for t in terms[1:]:
                total = total + t
        else:  # h == w == 1: TV loss is identically zero.
            total = jnp.zeros((b, l), jnp.float32)

        # Fold the B planes of this block into the resident (8, l) accumulator
        # using aligned sublane-group adds (pure VALU; no per-step XLU reduce,
        # no per-step scalar RMW).
        part = total[0:8, :]
        for k in range(1, g):
            part = part + total[k * 8:(k + 1) * 8, :]
        o_ref[...] = o_ref[...] + part

    return kernel


def tv_loss_detect(x, tv_loss_weight=1e-05):
    """x: (N, C, H, W). Returns weight * (h_tv + w_tv) / N (PyTorch semantics)."""
    n, c, h, w = x.shape
    nc = n * c
    l = h * w
    itemsize = jnp.dtype(x.dtype).itemsize

    # --- choose B (planes per grid step; block = (B, L)) ---------------------
    # ~1 MiB blocks sit at the measured ~85%-of-roofline tile size and stay well
    # inside v5e/v6e/v7x VMEM budgets when double buffered.
    target_block_bytes = 1 << 20
    b = (target_block_bytes // max(l * itemsize, 1)) // 8 * 8
    b = int(min(max(b, 8), 1024))
    # TODO(synk): for very large planes (8 * H * W * itemsize >> a few MiB),
    # additionally tile along H with a 1-row halo instead of whole planes.

    nc8 = _round_up(nc, 8)
    num_split = 2 if nc8 >= 16 else 1  # shard planes across v7x's 2 TensorCores
    per_split = _round_up(-(-nc8 // num_split), 8)
    b = min(b, per_split)
    n_inner = -(-per_split // b)
    nc_pad = num_split * n_inner * b

    x_flat = x.reshape(nc, l)
    if nc_pad > nc:
        # Zero padding planes contribute exactly 0 to both TV terms.
        x_flat = jnp.pad(x_flat, ((0, nc_pad - nc), (0, 0)))

    # {0,1} masks killing the wrap-around terms of the flat-axis shifts.
    col = jnp.arange(l, dtype=jnp.int32)
    wmask = ((col % w) != (w - 1)).astype(jnp.float32).reshape(1, l)
    hmask = (col < (h - 1) * w).astype(jnp.float32).reshape(1, l)

    kernel = _make_tv_kernel(h, w, b, l)

    partials = pl.pallas_call(
        kernel,
        out_shape=jax.ShapeDtypeStruct((num_split * 8, l), jnp.float32),
        grid_spec=pltpu.PrefetchScalarGridSpec(
            num_scalar_prefetch=0,
            grid=(num_split, n_inner),
            in_specs=[
                pl.BlockSpec((b, l), lambda s, i: (s * n_inner + i, 0)),
                pl.BlockSpec((1, l), lambda s, i: (0, 0)),
                pl.BlockSpec((1, l), lambda s, i: (0, 0)),
            ],
            out_specs=pl.BlockSpec((8, l), lambda s, i: (s, 0)),
        ),
        compiler_params=pltpu.CompilerParams(
            dimension_semantics=("parallel", "arbitrary"),
            vmem_limit_bytes=32 << 20,
        ),
    )(x_flat, wmask, hmask)

    total = jnp.sum(partials)
    return (jnp.float32(tv_loss_weight) * total) / jnp.float32(n)


def tv_loss_ref(x, tv_loss_weight=1e-05):
    """Pure-JAX reference matching the PyTorch forward."""
    n = x.shape[0]
    h_tv = jnp.sum(jnp.abs(x[:, :, 1:, :] - x[:, :, :-1, :]))
    w_tv = jnp.sum(jnp.abs(x[:, :, :, 1:] - x[:, :, :, :-1]))
    return tv_loss_weight * (h_tv + w_tv) / n


if __name__ == "__main__":
    key = jax.random.PRNGKey(0)
    x = jax.random.normal(key, (2, 4, 16, 16), dtype=jnp.float32)

    out = jax.block_until_ready(tv_loss_detect(x))
    ref = jax.block_until_ready(tv_loss_ref(x))

    assert jnp.allclose(out, ref, rtol=1e-5, atol=1e-6), (out, ref)
    print("KERNEL_OK")
</pallas_src>

<mosaic_0001>
module attributes {stable_mosaic.version = 11 : i64} {
  func.func @kernel(%arg0: i32, %arg1: i32, %arg2: memref<8x256xf32, #tpu.memory_space<vmem>>, %arg3: memref<1x256xf32, #tpu.memory_space<vmem>>, %arg4: memref<1x256xf32, #tpu.memory_space<vmem>>, %arg5: memref<8x256xf32, #tpu.memory_space<vmem>>) attributes {dimension_semantics = [#tpu.dimension_semantics<parallel>, #tpu.dimension_semantics<arbitrary>], iteration_bounds = array<i64: 1, 1>, scalar_prefetch = 0 : i64, scratch_operands = 0 : i64, tpu.core_type = #tpu.core_type<tc>, window_params = [{transform_indices = @transform_0, window_bounds = array<i64: 8, 256>}, {pipeline_mode = #tpu.pipeline_mode<synchronous>, transform_indices = @transform_1, window_bounds = array<i64: 1, 256>}, {pipeline_mode = #tpu.pipeline_mode<synchronous>, transform_indices = @transform_2, window_bounds = array<i64: 1, 256>}, {transform_indices = @transform_3, window_bounds = array<i64: 8, 256>}]} {
    %c0_i32 = arith.constant 0 : i32
    %0 = arith.cmpi eq, %arg1, %c0_i32 : i32
    %1 = arith.extui %0 : i1 to i32
    %c0_i32_0 = arith.constant 0 : i32
    %2 = arith.cmpi ne, %1, %c0_i32_0 : i32
    scf.if %2 {
      %cst = arith.constant 0.000000e+00 : f32
      %20 = vector.broadcast %cst : f32 to vector<8x256xf32>
      %c0_10 = arith.constant 0 : index
      %c0_11 = arith.constant 0 : index
      %21 = vector.load %arg5[%c0_10, %c0_11] : memref<8x256xf32, #tpu.memory_space<vmem>>, vector<8x256xf32>
      tpu.vector_store %arg5[%c0_10, %c0_11], %20 {strides = array<i32>} : memref<8x256xf32, #tpu.memory_space<vmem>>, vector<8x256xf32>,
    } else {
    }
    %c0 = arith.constant 0 : index
    %c0_1 = arith.constant 0 : index
    %3 = vector.load %arg2[%c0, %c0_1] : memref<8x256xf32, #tpu.memory_space<vmem>>, vector<8x256xf32>
    %c255_i32 = arith.constant 255 : i32
    %4 = tpu.dynamic_rotate %3 by %c255_i32 dim 1 : vector<8x256xf32>, i32 -> vector<8x256xf32>
    %5 = arith.subf %4, %3 : vector<8x256xf32>
    %6 = math.absf %5 : vector<8x256xf32>
    %c0_2 = arith.constant 0 : index
    %c0_3 = arith.constant 0 : index
    %7 = vector.load %arg3[%c0_2, %c0_3] : memref<1x256xf32, #tpu.memory_space<vmem>>, vector<1x256xf32>
    %8 = vector.broadcast %7 : vector<1x256xf32> to vector<8x256xf32>
    %9 = arith.mulf %6, %8 : vector<8x256xf32>
    %c240_i32 = arith.constant 240 : i32
    %10 = tpu.dynamic_rotate %3 by %c240_i32 dim 1 : vector<8x256xf32>, i32 -> vector<8x256xf32>
    %11 = arith.subf %10, %3 : vector<8x256xf32>
    %12 = math.absf %11 : vector<8x256xf32>
    %c0_4 = arith.constant 0 : index
    %c0_5 = arith.constant 0 : index
    %13 = vector.load %arg4[%c0_4, %c0_5] : memref<1x256xf32, #tpu.memory_space<vmem>>, vector<1x256xf32>
    %14 = vector.broadcast %13 : vector<1x256xf32> to vector<8x256xf32>
    %15 = arith.mulf %12, %14 : vector<8x256xf32>
    %16 = arith.addf %9, %15 : vector<8x256xf32>
    %c0_6 = arith.constant 0 : index
    %c0_7 = arith.constant 0 : index
    %17 = vector.load %arg5[%c0_6, %c0_7] : memref<8x256xf32, #tpu.memory_space<vmem>>, vector<8x256xf32>
    %18 = arith.addf %17, %16 : vector<8x256xf32>
    %c0_8 = arith.constant 0 : index
    %c0_9 = arith.constant 0 : index
    %19 = vector.load %arg5[%c0_8, %c0_9] : memref<8x256xf32, #tpu.memory_space<vmem>>, vector<8x256xf32>
    tpu.vector_store %arg5[%c0_8, %c0_9], %18 {strides = array<i32>} : memref<8x256xf32, #tpu.memory_space<vmem>>, vector<8x256xf32>,
    return
  }
  func.func @transform_0(%arg0: i32, %arg1: i32) -> (i32, i32) {
    %c1_i32 = arith.constant 1 : i32
    %0 = arith.muli %arg0, %c1_i32 : i32
    %1 = arith.addi %0, %arg1 : i32
    %c0_i32 = arith.constant 0 : i32
    %c0_i32_0 = arith.constant 0 : i32
    return %1, %c0_i32 : i32, i32
  }
  func.func @transform_1(%arg0: i32, %arg1: i32) -> (i32, i32) {
    %c0_i32 = arith.constant 0 : i32
    %c0_i32_0 = arith.constant 0 : i32
    %c0_i32_1 = arith.constant 0 : i32
    return %c0_i32, %c0_i32_0 : i32, i32
  }
  func.func @transform_2(%arg0: i32, %arg1: i32) -> (i32, i32) {
    %c0_i32 = arith.constant 0 : i32
    %c0_i32_0 = arith.constant 0 : i32
    %c0_i32_1 = arith.constant 0 : i32
    return %c0_i32, %c0_i32_0 : i32, i32
  }
  func.func @transform_3(%arg0: i32, %arg1: i32) -> (i32, i32) {
    %c0_i32 = arith.constant 0 : i32
    %c0_i32_0 = arith.constant 0 : i32
    return %arg0, %c0_i32 : i32, i32
  }
}

</mosaic_0001>

<bundles_post_ra>
// kernel: tpu_custom_call.1
= control target key start
LH: loop header
LB: loop body
LE: loop exit
PB: predicated region body
PF: predicated region fallthrough
CT: control target
= control target key end

     0   :  { %8 = vsyncpa [#allocation3], 0  ;;  %s222_s0 = inlined_call_operand.hbm [shape: f32[8,256], index: 0, kind: input, shape index: {}]   ;;  %s223_s1 = inlined_call_operand.vmem [shape: f32[1,256], index: 1, kind: input, shape index: {}]   ;;  %s224_s2 = inlined_call_operand.vmem [shape: f32[1,256], index: 2, kind: input, shape index: {}]   ;;  %s225_s3 = inlined_call_operand.hbm [shape: f32[8,256], index: 3, kind: output, shape index: {}]  }
   0x1   :  { %9 = vsyncpa [#allocation4], 0  ;;  %s168_s12 = smov [#allocation2]   ;;  %s120_s16 = scalar_lea.hbm %s222_s0, 256 }
   0x2   :  { %s20_s13 = sshll.u32 %s168_s12, 4  ;;  %p121_p0 = scmp.ne.s32.totalorder %s222_s0, %s120_s16  ;;  %s21_s13 = int_to_ptr.vmem [resolvable:$true] %s20_s13 }
   0x3   :  { %p124_p1 = scmp.lt.u32.totalorder %s120_s16, %s222_s0 }
   0x5   :  { %p126_p2 = pnand %p124_p1, %p121_p0 }
   0x7   :  { %129 = shalt.err (!%p126_p2)
}
   0x8   :  { %s130_s21 = scalar_lea.vmem %s21_s13, 256  ;;  %p135_p4 = scmp.lt.s32.totalorder %s21_s13, %s21_s13 }
   0x9   :  { %p131_p3 = scmp.ne.s32.totalorder %s21_s13, %s130_s21  ;;  %p136_p5 = scmp.lt.s32.totalorder %s130_s21, %s130_s21 }
   0xb   :  { %p137_p6 = por %p136_p5, %p135_p4 }
   0xd   :  { %p138_p7 = pnand %p137_p6, %p131_p3 }
   0xf   :  { %141 = shalt.err (!%p138_p7)
}
  0x10   :  { %23 = dma.hbm_to_vmem [thread:$0]  %s222_s0, 256, %s21_s13, [#allocation3]  }
  0x11   :  { %164 = dma.done.wait [#allocation3], 256  }
  0x12   :  { %165 = vsyncadd [#allocation3], 4294967040  ;;  %v38_v0 = vld [vmem:[#allocation2] sm:$0xff]  ;;  %s169_s24 = smov 112   ;;  %s170_s25 = smov 127   ;;  %v39_v1 = vld [vmem:[#allocation2 + $0x8] sm:$0xff]  ;;  %v44_v2 = vlaneseq }
  0x13   :  { %67 = vrot.lane.b32.xlu1 %v38_v0, %s169_s24  ;;  %40 = vrot.lane.b32.xlu0 %v38_v0, %s170_s25  ;;  %v78_v9 = vld [vmem:[%s224_s2] sm:$0x3] }
  0x14   :  { %v56_v3 = vshrl.u32 %v44_v2, 7  ;;  %v45_v4 = vand.u32 127, %v44_v2  ;;  %v53_v10 = vld [vmem:[%s223_s1] sm:$0x3]  ;;  %s171_s1 = smov [#allocation5]  }
  0x15   :  { %s106_s2 = sshll.u32 %s171_s1, 4  ;;  %s107_s2 = int_to_ptr.vmem [resolvable:$true] %s106_s2 }
  0x16   :  { %v57_v7 = vsub.s32 0, %v56_v3  ;;  %v61_v8 = vsub.s32 1, %v56_v3  ;;  %vm71_vm0 = vcmp.lt.s32.totalorder %v45_v4, 112  ;;  %vm46_vm1 = vcmp.lt.s32.totalorder %v45_v4, 127  ;;  %s142_s29 = scalar_lea.vmem %s107_s2, 256  ;;  %p147_p9 = scmp.lt.s32.totalorder %s107_s2, %s107_s2 }
  0x17   :  { %69 = vrot.lane.b32.xlu1 %v39_v1, %s169_s24  ;;  %42 = vrot.lane.b32.xlu0 %v39_v1, %s170_s25  ;;  %p143_p8 = scmp.ne.s32.totalorder %s107_s2, %s142_s29  ;;  %p148_p10 = scmp.lt.s32.totalorder %s142_s29, %s142_s29 }
  0x18   :  { %v83_v11 = vrot.slane %v78_v9, %v57_v7  ;;  %v87_v12 = vrot.slane %v78_v9, %v61_v8  ;;  %v58_v14 = vrot.slane %v53_v10, %v57_v7  ;;  %v62_v24 = vrot.slane %v53_v10, %v61_v8 }
  0x19   :  { %p149_p11 = por %p148_p10, %p147_p9 }
  0x1b   :  { %p150_p12 = pnand %p149_p11, %p143_p8 }
  0x85   :  { %v68_v5 = vpop.permute.xlu1 %67  ;;  %v41_v6 = vpop.permute.xlu0 %40 }
  0x89   :  { %v70_v13 = vpop.permute.xlu1 %69  ;;  %v43_v15 = vpop.permute.xlu0 %42 }
  0x8a   :  { %v72_v16 = vsel %vm71_vm0, %v68_v5, %v70_v13  ;;  %v73_v17 = vsel %vm71_vm0, %v70_v13, %v68_v5  ;;  %v47_v18 = vsel %vm46_vm1, %v41_v6, %v43_v15  ;;  %v48_v19 = vsel %vm46_vm1, %v43_v15, %v41_v6 }
  0x8b   :  { %v74_v20 = vsub.f32 %v72_v16, %v38_v0  ;;  %v75_v21 = vsub.f32 %v73_v17, %v39_v1  ;;  %v49_v22 = vsub.f32 %v47_v18, %v38_v0  ;;  %v50_v23 = vsub.f32 %v48_v19, %v39_v1 }
  0x8d   :  { %v76_v25 = vand.u32 2147483647, %v74_v20  ;;  %v77_v26 = vand.u32 2147483647, %v75_v21  ;;  %v51_v27 = vand.u32 2147483647, %v49_v22 }
  0x8e   :  { %v52_v28 = vand.u32 2147483647, %v50_v23 }
  0x8f   :  { %v90_v29 = vmul.f32 %v83_v11, %v76_v25  ;;  %v91_v30 = vmul.f32 %v87_v12, %v77_v26  ;;  %v65_v31 = vmul.f32 %v58_v14, %v51_v27 }
  0x90   :  { %v66_v32 = vmul.f32 %v62_v24, %v52_v28 }
  0x91   :  { %v92_v33 = vadd.f32 %v90_v29, %v65_v31 }
  0x92   :  { %v93_v34 = vadd.f32 %v91_v30, %v66_v32 }
  0x93   :  { %98 = vst [vmem:[#allocation5] sm:$0xff] %v92_v33 }
  0x94   :  { %99 = vst [vmem:[#allocation5 + $0x8] sm:$0xff] %v93_v34 }
  0x95   :  { %153 = shalt.err (!%p150_p12)
}
  0x96   :  { %s154_s5 = scalar_lea.hbm %s225_s3, 256 }
  0x97   :  { %p155_p13 = scmp.ne.s32.totalorder %s225_s3, %s154_s5  ;;  %p158_p0 = scmp.lt.u32.totalorder %s154_s5, %s225_s3 }
  0x99   :  { %p160_p1 = pnand %p158_p0, %p155_p13 }
  0x9b   :  { %163 = shalt.err (!%p160_p1)
}
  0x9c   :  { %109 = dma.vmem_to_hbm [thread:$0]  %s107_s2, 256, %s225_s3, [#allocation4]  }
  0x9d   :  { %166 = dma.done.wait [#allocation4], 256  }
  0x9e   :  { %167 = vsyncadd [#allocation4], 4294967040 }
  0x9f   :  { %113 = vsyncpa [#allocation3], 1 }
  0xa0   :  { %114 = vsyncpa [#allocation4], 1 }

</bundles_post_ra>
